<compile_context>
chip_gen: v7x
topology: tpu7x:2x2x1
jax: 0.10.0
libtpu: 0.0.40
codegen_flags: <defaults>
</compile_context>

<pallas_src>
import functools

import jax
import jax.numpy as jnp
from jax.experimental import pallas as pl
from jax.experimental.pallas import tpu as pltpu


def _round_up(x, m):
    return ((x + m - 1) // m) * m


def _patch_embed_kernel(x_ref, w_ref, b_ref, o_ref):
    # x_ref: (tm, K)   bf16 patch tile
    # w_ref: (K,  tn)  bf16 flattened conv-weight tile
    # b_ref: (1,  tn)  f32 bias tile (pre-cast in wrapper)
    # o_ref: (tm, tn)  bf16 projected patch tile
    acc = jnp.dot(x_ref[...], w_ref[...], preferred_element_type=jnp.float32)
    o_ref[...] = (acc + b_ref[...]).astype(o_ref.dtype)


def _vmem_budget_bytes():
    """Generation-aware VMEM cap with headroom for Mosaic-internal scratch."""
    try:
        cap = getattr(pltpu.get_tpu_info(), "vmem_capacity_bytes", None)
    except Exception:
        cap = None
    if not cap:
        cap = 64 << 20          # conservative: smallest (v7x per-TC) VMEM
    return (int(cap) * 3) // 4  # ~48 MiB on v7x, ~96 MiB on v5e/v6e


def prepare_patch_embed_params(weight, bias, compute_dtype=jnp.bfloat16):
    """Flatten + lane-pad the Conv2d parameters once (static per model).

    weight: (E, C, ph, pw) OIHW conv weight.  bias: (E,).
    Returns (w_flat, bias2d): ((K, Ep) compute_dtype, (1, Ep) float32) with
    Ep = round_up(E, 128) for lane-dense output stores.  K is NOT padded.
    """
    E, C, ph, pw = weight.shape
    K = C * ph * pw
    Ep = _round_up(E, 128)
    w_flat = weight.reshape(E, K).T.astype(compute_dtype)  # (K, E), (C,ph,pw) order
    bias2d = bias.astype(jnp.float32)
    if Ep != E:
        w_flat = jnp.pad(w_flat, ((0, 0), (0, Ep - E)))
        bias2d = jnp.pad(bias2d, (0, Ep - E))
    return w_flat, bias2d.reshape(1, Ep)


def patch_embed_forward(x, w_flat, bias2d, *, patch_size, embed_dim,
                        compute_dtype=jnp.bfloat16):
    """x: (B, C, H, W) NCHW.  w_flat/bias2d from prepare_patch_embed_params.
    Returns (B, num_patches, embed_dim) in compute_dtype (bf16)."""
    B, C, H, W = x.shape
    ph, pw = patch_size
    gh, gw = H // ph, W // pw
    num_patches = gh * gw
    K = C * ph * pw
    E = embed_dim
    Kw, Ep = w_flat.shape
    assert Kw == K, (Kw, K)
    M = B * num_patches

    # --- glue: patchify (cast + reshape/transpose only; no pads) ------------
    # (B, C, gh, ph, gw, pw) -> (B, gh, gw, C, ph, pw) -> (M, K)
    patches = x.astype(compute_dtype).reshape(B, C, gh, ph, gw, pw)
    patches = patches.transpose(0, 2, 4, 1, 3, 5).reshape(M, K)

    # --- M tiling: large 256-aligned tiles; ragged last block is masked -----
    if M >= 8192:
        tm = 1024
    elif M >= 2048:
        tm = 512
    elif M >= 512:
        tm = 256
    else:
        tm = _round_up(M, 8)           # tiny problems: overhead-dominated anyway

    # --- E tiling: keep the whole weight resident unless it is huge ---------
    in_itemsize = jnp.dtype(compute_dtype).itemsize
    if K * Ep * in_itemsize <= (32 << 20):
        tn = Ep                         # single E block, weight fetched once
    else:
        tn = 1024 if Ep % 1024 == 0 else 512   # >= 512, never 128

    out_dtype = compute_dtype           # bf16 output: halve the HBM writeback
    out_itemsize = jnp.dtype(out_dtype).itemsize

    vmem_budget = _vmem_budget_bytes()

    def per_step_bytes(tm_):
        # double-buffered patch / weight / bias tiles + output tile
        return 2 * (tm_ * K * in_itemsize + K * tn * in_itemsize
                    + tm_ * tn * out_itemsize + tn * 4)

    while tm > 256 and per_step_bytes(tm) > (vmem_budget * 4) // 5:
        tm //= 2

    grid = (pl.cdiv(M, tm), pl.cdiv(Ep, tn))
    vmem_limit = int(min(max(3 * per_step_bytes(tm), 16 << 20), vmem_budget))

    cost = pl.CostEstimate(
        flops=2 * M * K * Ep,
        transcendentals=0,
        bytes_accessed=(M * K + K * Ep) * in_itemsize + M * Ep * out_itemsize + Ep * 4,
    )

    out = pl.pallas_call(
        _patch_embed_kernel,
        out_shape=jax.ShapeDtypeStruct((M, Ep), out_dtype),
        grid_spec=pltpu.PrefetchScalarGridSpec(
            num_scalar_prefetch=0,
            grid=grid,
            in_specs=[
                pl.BlockSpec((tm, K), lambda i, j: (i, 0)),
                pl.BlockSpec((K, tn), lambda i, j: (0, j)),
                pl.BlockSpec((1, tn), lambda i, j: (0, j)),
            ],
            out_specs=pl.BlockSpec((tm, tn), lambda i, j: (i, j)),
        ),
        compiler_params=pltpu.CompilerParams(
            dimension_semantics=("parallel", "parallel"),
            vmem_limit_bytes=vmem_limit,
            allow_input_fusion=[True, False, False],
        ),
        cost_estimate=cost,
    )(patches, w_flat, bias2d)

    if Ep != E:
        out = out[:, :E]
    return out.reshape(B, num_patches, E)


def _reference_forward(x, weight, bias, patch_size):
    # pure-JAX f32 reference: conv2d with stride == kernel, flatten(2).transpose(1,2)
    y = jax.lax.conv_general_dilated(
        x, weight,
        window_strides=patch_size,
        padding="VALID",
        dimension_numbers=("NCHW", "OIHW", "NCHW"),
    )
    y = y + bias.reshape(1, -1, 1, 1)
    B, E, gh, gw = y.shape
    return y.reshape(B, E, gh * gw).transpose(0, 2, 1)


if __name__ == "__main__":
    # small shapes consistent with the module: img_size=16, patch_size=4,
    # in_chans=4, embed_dim=32  ->  num_patches = 16
    B, C, H, W = 2, 4, 16, 16
    ph = pw = 4
    E = 32

    key = jax.random.PRNGKey(0)
    kx, kw, kb = jax.random.split(key, 3)
    x = jax.random.normal(kx, (B, C, H, W), dtype=jnp.float32)
    # deterministic synthetic Conv2d parameters (shape matches nn.Conv2d(C, E, 4, 4))
    weight = jax.random.normal(kw, (E, C, ph, pw), dtype=jnp.float32) * 0.02
    bias = jax.random.normal(kb, (E,), dtype=jnp.float32) * 0.02

    # one-time parameter prep (flatten / lane-pad / bf16-cast the conv weight)
    w_flat, bias2d = prepare_patch_embed_params(weight, bias)

    fwd = jax.jit(functools.partial(patch_embed_forward,
                                    patch_size=(ph, pw), embed_dim=E))
    out = fwd(x, w_flat, bias2d)
    out = jax.block_until_ready(out)

    ref = _reference_forward(x, weight, bias, (ph, pw))
    assert out.shape == (B, (H // ph) * (W // pw), E), out.shape
    # bf16 operands + bf16 output with f32 accumulation -> bf16-class tolerance
    err = float(jnp.max(jnp.abs(out.astype(jnp.float32) - ref)))
    assert jnp.allclose(out.astype(jnp.float32), ref, atol=2e-2, rtol=2e-2), err

    print("KERNEL_OK")
</pallas_src>

<mosaic_0001>
module attributes {stable_mosaic.version = 11 : i64} {
  func.func @_patch_embed_kernel(%arg0: i32, %arg1: i32, %arg2: memref<32x64xbf16, #tpu.memory_space<vmem>>, %arg3: memref<64x128xbf16, #tpu.memory_space<vmem>>, %arg4: memref<1x128xf32, #tpu.memory_space<vmem>>, %arg5: memref<32x128xbf16, #tpu.memory_space<vmem>>) attributes {dimension_semantics = [#tpu.dimension_semantics<parallel>, #tpu.dimension_semantics<parallel>], iteration_bounds = array<i64: 1, 1>, scalar_prefetch = 0 : i64, scratch_operands = 0 : i64, tpu.core_type = #tpu.core_type<tc>, window_params = [{transform_indices = @transform_0, window_bounds = array<i64: 32, 64>}, {transform_indices = @transform_1, window_bounds = array<i64: 64, 128>}, {transform_indices = @transform_2, window_bounds = array<i64: 1, 128>}, {transform_indices = @transform_3, window_bounds = array<i64: 32, 128>}]} {
    %c0 = arith.constant 0 : index
    %c0_0 = arith.constant 0 : index
    %0 = vector.load %arg2[%c0, %c0_0] : memref<32x64xbf16, #tpu.memory_space<vmem>>, vector<32x64xbf16>
    %c0_1 = arith.constant 0 : index
    %c0_2 = arith.constant 0 : index
    %1 = vector.load %arg3[%c0_1, %c0_2] : memref<64x128xbf16, #tpu.memory_space<vmem>>, vector<64x128xbf16>
    %cst = arith.constant dense<0.000000e+00> : vector<32x128xf32>
    %2 = tpu.matmul %0, %1, %cst {dimension_numbers = #tpu.dot_dimension_numbers<[1], [0], [0], [1], [0, 0, 1, 1], [], []>} : vector<32x64xbf16>, vector<64x128xbf16>, vector<32x128xf32> -> vector<32x128xf32>
    %c0_3 = arith.constant 0 : index
    %c0_4 = arith.constant 0 : index
    %3 = vector.load %arg4[%c0_3, %c0_4] : memref<1x128xf32, #tpu.memory_space<vmem>>, vector<1x128xf32>
    %4 = vector.broadcast %3 : vector<1x128xf32> to vector<32x128xf32>
    %5 = arith.addf %2, %4 : vector<32x128xf32>
    %6 = arith.truncf %5 : vector<32x128xf32> to vector<32x128xbf16>
    %c0_5 = arith.constant 0 : index
    %c0_6 = arith.constant 0 : index
    %7 = vector.load %arg5[%c0_5, %c0_6] : memref<32x128xbf16, #tpu.memory_space<vmem>>, vector<32x128xbf16>
    tpu.vector_store %arg5[%c0_5, %c0_6], %6 {strides = array<i32>} : memref<32x128xbf16, #tpu.memory_space<vmem>>, vector<32x128xbf16>,
    return
  }
  func.func @transform_0(%arg0: i32, %arg1: i32) -> (i32, i32) {
    %c0_i32 = arith.constant 0 : i32
    %c0_i32_0 = arith.constant 0 : i32
    return %arg0, %c0_i32 : i32, i32
  }
  func.func @transform_1(%arg0: i32, %arg1: i32) -> (i32, i32) {
    %c0_i32 = arith.constant 0 : i32
    %c0_i32_0 = arith.constant 0 : i32
    return %c0_i32, %arg1 : i32, i32
  }
  func.func @transform_2(%arg0: i32, %arg1: i32) -> (i32, i32) {
    %c0_i32 = arith.constant 0 : i32
    %c0_i32_0 = arith.constant 0 : i32
    return %c0_i32, %arg1 : i32, i32
  }
  func.func @transform_3(%arg0: i32, %arg1: i32) -> (i32, i32) {
    %c0_i32 = arith.constant 0 : i32
    return %arg0, %arg1 : i32, i32
  }
}

</mosaic_0001>

<bundles_post_ra>
// kernel: patch_embed_forward.1
= control target key start
LH: loop header
LB: loop body
LE: loop exit
PB: predicated region body
PF: predicated region fallthrough
CT: control target
= control target key end

     0   :  { %vm69_vm0 = vcmask 523264   ;;  %s296_s0 = inlined_call_operand.vmem [shape: bf16[32,64], index: 0, kind: input, shape index: {}]   ;;  %s297_s1 = inlined_call_operand.vmem [shape: bf16[64,128], index: 1, kind: input, shape index: {}]   ;;  %s298_s2 = inlined_call_operand.vmem [shape: f32[1,128], index: 2, kind: input, shape index: {}]   ;;  %s299_s3 = inlined_call_operand.hbm [shape: bf16[32,128], index: 3, kind: output, shape index: {}]  }
   0x1   :  { %v210_v0 = vld [vmem:[%s297_s1] sm:$0xff]   ;;  %v211_v1 = vld [vmem:[%s297_s1 + $0x8] sm:$0xff]   ;;  %v212_v2 = vld [vmem:[%s297_s1 + $0x10] sm:$0xff]  }
   0x2   :  { %195 = vmatprep.subr.bf16.mxu0 %v210_v0  ;;  %v214_v3 = vld [vmem:[%s296_s0] sm:$0xff]  }
   0x3   :  { %196 = vmatpush3.bf16.msra.mxu0 %v210_v0  ;;  %203 = vmatprep.mubr.msk.bf16.mxu0 %vm69_vm0, %v214_v3 }
   0x4   :  { %197 = vmatprep.subr.bf16.mxu0 %v211_v1 }
   0x5   :  { %8 = vsyncpa [#allocation3], 0  ;;  %v213_v4 = vld [vmem:[%s297_s1 + $0x18] sm:$0xff]   ;;  %v215_v5 = vld [vmem:[%s296_s0 + $0x8] sm:$0xff]   ;;  %s240_s26 = smov [#allocation2]  }
   0x6   :  { %v161_v7 = vld [vmem:[%s298_s2] ss:$0 sm:$0xff]  ;;  %s150_s27 = sshll.u32 %s240_s26, 4  ;;  %s151_s27 = int_to_ptr.vmem [resolvable:$true] %s150_s27 }
   0x7   :  { %198 = vmatpush3.bf16.msra.mxu0 %v211_v1  ;;  %s216_s0 = scalar_lea.vmem %s151_s27, 256  ;;  %p221_p1 = scmp.lt.s32.totalorder %s151_s27, %s151_s27 }
   0x8   :  { %199 = vmatprep.subr.bf16.mxu0 %v212_v2  ;;  %p217_p0 = scmp.ne.s32.totalorder %s151_s27, %s216_s0  ;;  %p222_p2 = scmp.lt.s32.totalorder %s216_s0, %s216_s0 }
   0xa   :  { %p223_p3 = por %p222_p2, %p221_p1 }
   0xb   :  { %200 = vmatpush3.bf16.msra.mxu0 %v212_v2 }
   0xc   :  { %201 = vmatprep.subr.bf16.mxu0 %v213_v4  ;;  %p224_p4 = pnand %p223_p3, %p217_p0 }
   0xf   :  { %202 = vmatpush3.bf16.msra.mxu0 %v213_v4 }
  0x12   :  { %204 = vmatmul.mubr.msk.bf16.vlgmr.msra.gmra.mrb[0].mxu0 %vm69_vm0, %v215_v5 }
  0xe5   :  { %v205_v6 = vpop.f32.mrb[0].mxu0 }
  0xe6   :  { %v110_v8 = vpop.f32.mrb[1].mxu0  ;;  %v119_v10 = vadd.f32 %v205_v6, %v161_v7 }
  0xe7   :  { %v206_v9 = vpop.f32.mrb[2].mxu0  ;;  %v111_v13 = vadd.f32 %v161_v7, %v110_v8 }
  0xe8   :  { %v122_v11 = vadd.f32 %v206_v9, %v161_v7  ;;  %v113_v12 = vpop.f32.mrb[3].mxu0 }
  0xe9   :  { %v114_v14 = vadd.f32 %v161_v7, %v113_v12 }
  0xea   :  { %v186_v15 = vpack.c.bf16 %v122_v11, %v119_v10 }
  0xeb   :  { %v181_v16 = vpack.c.bf16 %v114_v14, %v111_v13 }
  0xec   :  { %188 = vst [vmem:[#allocation2 + $0x8] sm:$0xff] %v186_v15  }
  0xed   :  { %182 = vst [vmem:[#allocation2] sm:$0xff] %v181_v16  }
  0xee   :  { %227 = shalt.err (!%p224_p4)
}
  0xef   :  { %s228_s28 = scalar_lea.hbm %s299_s3, 256 }
  0xf0   :  { %p229_p5 = scmp.ne.s32.totalorder %s299_s3, %s228_s28  ;;  %p232_p6 = scmp.lt.u32.totalorder %s228_s28, %s299_s3 }
  0xf2   :  { %p234_p7 = pnand %p232_p6, %p229_p5 }
  0xf4   :  { %237 = shalt.err (!%p234_p7)
}
  0xf5   :  { %s241_s6 = smov 64   ;;  %s242_s7 = smov 4  }
  0xf6   :  { %156 = dma.vmem_to_hbm [thread:$0]  %s151_s27, 256, %s299_s3, [#allocation3], %s241_s6, %s241_s6, %s242_s7  }
  0xf7   :  { %238 = dma.done.wait [#allocation3], 256  }
  0xf8   :  { %239 = vsyncadd [#allocation3], 4294967040 }
  0xf9   :  { %160 = vsyncpa [#allocation3], 1 }

</bundles_post_ra>
